<compile_context>
chip_gen: v5e
topology: v5e:2x2
jax: 0.10.0
libtpu: 0.0.40
codegen_flags: <defaults>
</compile_context>

<pallas_src>
import functools

import jax
import jax.numpy as jnp
from jax.experimental import pallas as pl
from jax.experimental.pallas import tpu as pltpu


def _layernorm_kernel(x_ref, gb_ref, o_ref, *, eps, act):
    # x_ref:  (TM, D) tile of rows. The reduction is over the full D, which is
    #         never split across grid steps.
    # gb_ref: (2, D) -> row 0 = gamma, row 1 = beta (resident, same block
    #         every grid step, so it is loaded once).
    #
    # Tail block: rows past the true extent are read-padded (stale VMEM) and
    # may produce garbage statistics, but the output block write is masked to
    # in-bounds rows, so nothing downstream ever consumes those lanes.
    x = x_ref[...].astype(jnp.float32)

    # Centered two-pass statistics in f32: avoids the E[x^2]-mean^2
    # cancellation risk and matches torch.nn.LayerNorm. The second pass over
    # the VMEM-resident tile is free under the HBM roofline.
    mean = jnp.mean(x, axis=-1, keepdims=True)
    centered = x - mean
    var = jnp.mean(centered * centered, axis=-1, keepdims=True)
    inv = jax.lax.rsqrt(var + eps)

    gamma = gb_ref[0:1, :].astype(jnp.float32)  # (1, D)
    beta = gb_ref[1:2, :].astype(jnp.float32)   # (1, D)

    y = centered * inv * gamma + beta
    if act is not None:
        # Fused elementwise fn (caller-guaranteed to be purely elementwise).
        y = act(y)
    o_ref[...] = y.astype(o_ref.dtype)


def _round_up(x, m):
    return ((x + m - 1) // m) * m


def _tpu_params():
    """Return (usable VMEM bytes per TensorCore, TensorCores per chip)."""
    vmem_bytes = 64 << 20  # conservative fallback (v7x-sized)
    num_tc = 1
    try:
        info = pltpu.get_tpu_info()
        vmem_bytes = int(getattr(info, "vmem_capacity_bytes", vmem_bytes))
    except Exception:
        pass
    try:
        kind = str(getattr(jax.devices()[0], "device_kind", "")).lower()
        if "v7" in kind:
            num_tc = 2                      # v7x: 2 TensorCores per chip
            vmem_bytes = min(vmem_bytes, 64 << 20)  # 64 MiB per TC
    except Exception:
        pass
    return vmem_bytes, num_tc


def _pick_row_tile(rows, d, dtype, vmem_bytes, num_tc):
    """Largest sublane-aligned row tile that fits the per-generation VMEM budget."""
    itemsize = jnp.dtype(dtype).itemsize
    sublane = {4: 8, 2: 16, 1: 32}.get(itemsize, 8)

    # Live VMEM per row of tile:
    #   input  tile (double-buffered): 2 * d * itemsize
    #   output tile (double-buffered): 2 * d * itemsize
    #   ~3 f32 temporaries in the body (x_f32 / centered / y): 3 * 4 * d
    per_row_bytes = 4 * d * itemsize + 12 * d

    # Spend at most ~40% of physical VMEM on this kernel's working set, and
    # cap the *input* tile at 8 MiB (128-MiB chips) / 4 MiB (64-MiB v7x) --
    # large enough to keep the ~0.35 us per-step overhead under ~5%.
    budget = int(vmem_bytes * 0.4)
    in_tile_cap = (8 << 20) if vmem_bytes >= (96 << 20) else (4 << 20)
    tm = min(budget // per_row_bytes, in_tile_cap // max(1, d * itemsize))
    tm = max(sublane, (tm // sublane) * sublane)

    rows_rounded = _round_up(rows, sublane)
    tm = min(tm, rows_rounded)

    # Force >=2 (roughly equal) row blocks only when there is more than one
    # TensorCore to feed (v7x megacore); on 1-TC chips (v5e/v6e) take the
    # whole problem as one tile when it fits.
    if num_tc > 1 and rows_rounded > sublane:
        per_core = _round_up(-(-rows_rounded // num_tc), sublane)
        tm = min(tm, max(sublane, per_core))
    return tm, per_row_bytes


def layer_norm_pallas(x, gb, *, eps=1e-5, act=None):
    """LayerNorm over the last axis of x (any leading dims), via Pallas.

    `gb` is the pre-packed (2, D) [gamma; beta] operand. If `act` is given it
    must be a purely elementwise JAX callable; it is fused into the store.
    """
    orig_shape = x.shape
    d = orig_shape[-1]
    rows = 1
    for s in orig_shape[:-1]:
        rows *= s
    x2 = x.reshape(rows, d)  # leading-dim reshape: no data movement

    vmem_bytes, num_tc = _tpu_params()
    tm, per_row_bytes = _pick_row_tile(rows, d, x.dtype, vmem_bytes, num_tc)
    grid = (pl.cdiv(rows, tm),)  # partial last block: read-padded, write-masked

    # Scoped-VMEM limit = estimated working set (+ gb + slack), not a blanket
    # number; stays <= ~32 MiB on v7x and well within 128-MiB chips.
    est = tm * per_row_bytes + 2 * 2 * d * 4 + (2 << 20)
    vmem_limit = max(16 << 20, min(est, int(vmem_bytes * 0.55)))

    # NOTE: for real transformer configs D % 128 == 0 keeps stores lane-dense
    # (unmasked vst); odd/small D (like the demo below) falls back to masked
    # stores, which is correct but slower on the store path.
    out = pl.pallas_call(
        functools.partial(_layernorm_kernel, eps=eps, act=act),
        out_shape=jax.ShapeDtypeStruct((rows, d), x.dtype),
        grid_spec=pltpu.PrefetchScalarGridSpec(
            num_scalar_prefetch=0,
            grid=grid,
            in_specs=[
                pl.BlockSpec((tm, d), lambda i: (i, 0)),
                pl.BlockSpec((2, d), lambda i: (0, 0)),
            ],
            out_specs=pl.BlockSpec((tm, d), lambda i: (i, 0)),
        ),
        compiler_params=pltpu.CompilerParams(
            dimension_semantics=("parallel",),
            vmem_limit_bytes=vmem_limit,
        ),
    )(x2, gb)

    return out.reshape(orig_shape)


class LayerNormalize:
    """JAX/Pallas equivalent of PyTorch LayerNormalize(dim, fn): fn(LayerNorm(x))."""

    def __init__(self, dim, fn, eps=1e-5, fuse_fn_elementwise=False):
        # nn.LayerNorm default init: weight = ones, bias = zeros (deterministic).
        gamma = jnp.ones((dim,), dtype=jnp.float32)
        beta = jnp.zeros((dim,), dtype=jnp.float32)
        # Pack gamma/beta once here (hoisted out of the per-call path).
        self.gb = jnp.stack([gamma, beta], axis=0)
        self.eps = eps
        self.fn = fn
        # Only set True when `fn` is a pure elementwise callable (activation,
        # scale, ...): it is then fused into the kernel's store. A
        # non-elementwise fn fused here would be silently wrong.
        self.fuse_fn_elementwise = fuse_fn_elementwise
        # TODO(synk): `fn` in the original model is an arbitrary sub-module
        # (attention / MLP); those stay outside the norm kernel.

    def __call__(self, x, **kwargs):
        if self.fuse_fn_elementwise and not kwargs:
            return layer_norm_pallas(x, self.gb, eps=self.eps, act=self.fn)
        y = layer_norm_pallas(x, self.gb, eps=self.eps)
        return self.fn(y, **kwargs)


if __name__ == "__main__":
    key = jax.random.PRNGKey(0)
    B, S, D = 2, 8, 32
    # Add a large per-row offset to exercise the centered-variance numerics.
    x = jax.random.normal(key, (B, S, D), dtype=jnp.float32) + 100.0

    # fn is a generic wrapped module in the original code; identity here.
    module = LayerNormalize(D, fn=lambda y: y)
    out = jax.block_until_ready(module(x))

    # Also exercise the fused-elementwise path (identity -> same result).
    module_fused = LayerNormalize(D, fn=lambda y: y, fuse_fn_elementwise=True)
    out_fused = jax.block_until_ready(module_fused(x))

    # Sanity check against plain-JAX layernorm (gamma=1, beta=0).
    mean = jnp.mean(x, axis=-1, keepdims=True)
    var = jnp.mean((x - mean) ** 2, axis=-1, keepdims=True)
    ref = (x - mean) * jax.lax.rsqrt(var + 1e-5)

    assert out.shape == x.shape
    assert jnp.max(jnp.abs(out - ref)) < 1e-4
    assert jnp.max(jnp.abs(out_fused - ref)) < 1e-4

    print("KERNEL_OK")
</pallas_src>

<mosaic_0001>
module attributes {stable_mosaic.version = 11 : i64} {
  func.func @_layernorm_kernel(%arg0: i32, %arg1: memref<16x32xf32, #tpu.memory_space<vmem>>, %arg2: memref<2x32xf32, #tpu.memory_space<vmem>>, %arg3: memref<16x32xf32, #tpu.memory_space<vmem>>) attributes {dimension_semantics = [#tpu.dimension_semantics<parallel>], iteration_bounds = array<i64: 1>, scalar_prefetch = 0 : i64, scratch_operands = 0 : i64, tpu.core_type = #tpu.core_type<tc>, window_params = [{transform_indices = @transform_0, window_bounds = array<i64: 16, 32>}, {pipeline_mode = #tpu.pipeline_mode<synchronous>, transform_indices = @transform_1, window_bounds = array<i64: 2, 32>}, {transform_indices = @transform_2, window_bounds = array<i64: 16, 32>}]} {
    %c0 = arith.constant 0 : index
    %c0_0 = arith.constant 0 : index
    %0 = vector.load %arg1[%c0, %c0_0] : memref<16x32xf32, #tpu.memory_space<vmem>>, vector<16x32xf32>
    %cst = arith.constant dense<0.000000e+00> : vector<16xf32>
    %1 = vector.multi_reduction <add>, %0, %cst [1] : vector<16x32xf32> to vector<16xf32>
    %2 = vector.shape_cast %1 : vector<16xf32> to vector<16x1xf32>
    %cst_1 = arith.constant 3.200000e+01 : f32
    %3 = vector.broadcast %cst_1 : f32 to vector<16x1xf32>
    %4 = arith.divf %2, %3 : vector<16x1xf32>
    %5 = vector.broadcast %4 : vector<16x1xf32> to vector<16x32xf32>
    %6 = arith.subf %0, %5 : vector<16x32xf32>
    %7 = arith.mulf %6, %6 : vector<16x32xf32>
    %cst_2 = arith.constant dense<0.000000e+00> : vector<16xf32>
    %8 = vector.multi_reduction <add>, %7, %cst_2 [1] : vector<16x32xf32> to vector<16xf32>
    %9 = vector.shape_cast %8 : vector<16xf32> to vector<16x1xf32>
    %cst_3 = arith.constant 3.200000e+01 : f32
    %10 = vector.broadcast %cst_3 : f32 to vector<16x1xf32>
    %11 = arith.divf %9, %10 : vector<16x1xf32>
    %cst_4 = arith.constant 9.99999974E-6 : f32
    %12 = vector.broadcast %cst_4 : f32 to vector<16x1xf32>
    %13 = arith.addf %11, %12 : vector<16x1xf32>
    %14 = math.rsqrt %13 : vector<16x1xf32>
    %c0_5 = arith.constant 0 : index
    %c0_6 = arith.constant 0 : index
    %15 = vector.load %arg2[%c0_5, %c0_6] : memref<2x32xf32, #tpu.memory_space<vmem>>, vector<1x32xf32>
    %c1 = arith.constant 1 : index
    %c0_7 = arith.constant 0 : index
    %16 = vector.load %arg2[%c1, %c0_7] : memref<2x32xf32, #tpu.memory_space<vmem>>, vector<1x32xf32>
    %17 = vector.broadcast %14 : vector<16x1xf32> to vector<16x32xf32>
    %18 = arith.mulf %6, %17 : vector<16x32xf32>
    %19 = vector.broadcast %15 : vector<1x32xf32> to vector<16x32xf32>
    %20 = arith.mulf %18, %19 : vector<16x32xf32>
    %21 = vector.broadcast %16 : vector<1x32xf32> to vector<16x32xf32>
    %22 = arith.addf %20, %21 : vector<16x32xf32>
    %c0_8 = arith.constant 0 : index
    %c0_9 = arith.constant 0 : index
    %23 = vector.load %arg3[%c0_8, %c0_9] : memref<16x32xf32, #tpu.memory_space<vmem>>, vector<16x32xf32>
    tpu.vector_store %arg3[%c0_8, %c0_9], %22 {strides = array<i32>} : memref<16x32xf32, #tpu.memory_space<vmem>>, vector<16x32xf32>,
    return
  }
  func.func @transform_0(%arg0: i32) -> (i32, i32) {
    %c0_i32 = arith.constant 0 : i32
    %c0_i32_0 = arith.constant 0 : i32
    return %arg0, %c0_i32 : i32, i32
  }
  func.func @transform_1(%arg0: i32) -> (i32, i32) {
    %c0_i32 = arith.constant 0 : i32
    %c0_i32_0 = arith.constant 0 : i32
    %c0_i32_1 = arith.constant 0 : i32
    return %c0_i32, %c0_i32_0 : i32, i32
  }
  func.func @transform_2(%arg0: i32) -> (i32, i32) {
    %c0_i32 = arith.constant 0 : i32
    %c0_i32_0 = arith.constant 0 : i32
    return %arg0, %c0_i32 : i32, i32
  }
}

</mosaic_0001>

<bundles_post_ra>
// kernel: tpu_custom_call.1
= control target key start
LH: loop header
LB: loop body
LE: loop exit
PB: predicated region body
PF: predicated region fallthrough
CT: control target
= control target key end

     0   :  { %7 = vsyncpa [#allocation3], 0  ;;  %s260_s0 = inlined_call_operand.hbm [shape: f32[16,32], index: 0, kind: input, shape index: {}]   ;;  %s261_s1 = inlined_call_operand.hbm [shape: f32[2,32], index: 1, kind: input, shape index: {}]   ;;  %s262_s2 = inlined_call_operand.hbm [shape: f32[16,32], index: 2, kind: output, shape index: {}]  }
   0x1   :  { %8 = vsyncpa [#allocation6], 0 }
   0x2   :  { %9 = vsyncpa [#allocation4], 0  ;;  %s14_s11 = sshll.u32 %s260_s0, 4  ;;  %s218_s12 = smov [#allocation2]   ;;  %s15_s11 = int_to_ptr.hbm [resolvable:$true] %s14_s11 }
   0x3   :  { %s16_s13 = sshll.u32 %s218_s12, 4  ;;  %s28_s16 = sshll.u32 %s261_s1, 4  ;;  %s17_s13 = int_to_ptr.vmem [resolvable:$true] %s16_s13  ;;  %s29_s16 = int_to_ptr.hbm [resolvable:$true] %s28_s16 }
   0x4   :  { %s219_s17 = smov 128   ;;  %s220_s18 = smov 8  }
   0x5   :  { %22 = dma.hbm_to_vmem [thread:$0]  %s15_s11, 256, %s17_s13, [#allocation3], %s219_s17, %s219_s17, %s220_s18  }
   0x6   :  { %s221_s19 = smov [#allocation5]  }
   0x7   :  { %s30_s20 = sshll.u32 %s221_s19, 4  ;;  %s31_s20 = int_to_ptr.vmem [resolvable:$true] %s30_s20 }
   0x8   :  { %33 = dma.hbm_to_vmem [thread:$0]  %s29_s16, 32, %s31_s20, [#allocation6]  }
   0x9   :  { %212 = dma.done.wait [#allocation3], 256  }
   0xa   :  { %213 = vsyncadd [#allocation3], 4294967040 }
   0xb   :  { %214 = dma.done.wait [#allocation6], 32  }
   0xc   :  { %215 = vsyncadd [#allocation6], 4294967264  ;;  %vm44_vm0 = vcmask 261120   ;;  %v42_v0 = vld [vmem:[#allocation2] sm:$0xff]  ;;  %v43_v2 = vld [vmem:[#allocation2 + $0x8] sm:$0xff]  ;;  %v222_v4 = vmov 32.0  }
   0xd   :  { %v45_v1 = vsel %vm44_vm0, %v42_v0, 0.0  ;;  %v48_v3 = vsel %vm44_vm0, %v43_v2, 0.0  ;;  %134 = vrcp.f32 %v222_v4  ;;  %v132_v35 = vld [vmem:[#allocation5] ss:$0 sm:$0xff]  ;;  %v133_v39 = vld [vmem:[#allocation5 + $0x1] ss:$0 sm:$0xff] }
   0xe   :  { %46 = vadd.xlane.f32.xlu0 %v45_v1  ;;  %s223_s0 = smov [#allocation7]   ;;  %s112_s23 = sshll.u32 %s262_s2, 4  ;;  %s113_s23 = int_to_ptr.hbm [resolvable:$true] %s112_s23 }
   0xf   :  { %s110_s1 = sshll.u32 %s223_s0, 4  ;;  %s111_s1 = int_to_ptr.vmem [resolvable:$true] %s110_s1 }
  0x13   :  { %v135_v5 = vpop.eup %134 }
  0x14   :  { %v52_v6 = vmul.f32 32.0, %v135_v5  ;;  %vm56_vm1 = vweird.f32 %v135_v5 }
  0x16   :  { %49 = vadd.xlane.f32.xlu0 %v48_v3  ;;  %v53_v7 = vsub.f32 1.0, %v52_v6 }
  0x18   :  { %v54_v8 = vmul.f32 %v135_v5, %v53_v7 }
  0x1a   :  { %v55_v9 = vadd.f32 %v135_v5, %v54_v8 }
  0x1c   :  { %v57_v10 = vsel %vm56_vm1, %v135_v5, %v55_v9 }
  0x81   :  { %v47_v11 = vpop.xlane.xlu0 %46 }
  0x82   :  { %v58_v12 = vmul.f32 %v57_v10, %v47_v11 }
  0x84   :  { %v60_v13 = vsub.f32 %v42_v0, %v58_v12 }
  0x86   :  { %v62_v14 = vmul.f32 %v60_v13, %v60_v13 }
  0x88   :  { %v64_v15 = vsel %vm44_vm0, %v62_v14, 0.0 }
  0x89   :  { %65 = vadd.xlane.f32.xlu1 %v64_v15  ;;  %v50_v16 = vpop.xlane.xlu0 %49 }
  0x8a   :  { %v59_v17 = vmul.f32 %v57_v10, %v50_v16 }
  0x8c   :  { %v61_v18 = vsub.f32 %v43_v2, %v59_v17 }
  0x8e   :  { %v63_v19 = vmul.f32 %v61_v18, %v61_v18 }
  0x90   :  { %v67_v20 = vsel %vm44_vm0, %v63_v19, 0.0 }
  0x91   :  { %68 = vadd.xlane.f32.xlu1 %v67_v20 }
  0xfc   :  { %v66_v21 = vpop.xlane.xlu1 %65 }
  0xfd   :  { %v70_v22 = vmul.f32 %v66_v21, %v57_v10 }
  0xff   :  { %v72_v23 = vadd.f32 1e-05, %v70_v22 }
 0x101   :  { %136 = vrsqrt.f32 %v72_v23  ;;  %vm80_vm3 = vweird.f32 %v72_v23 }
 0x104   :  { %v69_v24 = vpop.xlane.xlu1 %68 }
 0x105   :  { %v71_v25 = vmul.f32 %v69_v24, %v57_v10 }
 0x107   :  { %v137_v26 = vpop.eup %136  ;;  %v73_v27 = vadd.f32 1e-05, %v71_v25 }
 0x108   :  { %v75_v28 = vmul.f32 %v137_v26, %v72_v23  ;;  %vm81_vm2 = vweird.f32 %v137_v26 }
 0x109   :  { %138 = vrsqrt.f32 %v73_v27  ;;  %vm82_vm4 = vmor %vm80_vm3, %vm81_vm2  ;;  %vm90_vm6 = vweird.f32 %v73_v27 }
 0x10a   :  { %v76_v29 = vmul.f32 %v137_v26, %v75_v28 }
 0x10c   :  { %v77_v30 = vmul.f32 0.5, %v76_v29 }
 0x10e   :  { %v78_v31 = vsub.f32 1.5, %v77_v30 }
 0x10f   :  { %v139_v32 = vpop.eup %138 }
 0x110   :  { %v79_v33 = vmul.f32 %v137_v26, %v78_v31  ;;  %v85_v34 = vmul.f32 %v139_v32, %v73_v27  ;;  %vm91_vm5 = vweird.f32 %v139_v32 }
 0x111   :  { %vm92_vm7 = vmor %vm90_vm6, %vm91_vm5 }
 0x112   :  { %v83_v36 = vsel %vm82_vm4, %v137_v26, %v79_v33  ;;  %v86_v37 = vmul.f32 %v139_v32, %v85_v34 }
 0x113   :  { %v96_v38 = vmul.f32 %v83_v36, %v60_v13 }
 0x114   :  { %v87_v40 = vmul.f32 0.5, %v86_v37 }
 0x115   :  { %v99_v41 = vmul.f32 %v132_v35, %v96_v38 }
 0x116   :  { %v88_v42 = vsub.f32 1.5, %v87_v40 }
 0x117   :  { %v102_v43 = vadd.f32 %v133_v39, %v99_v41 }
 0x118   :  { %v89_v44 = vmul.f32 %v139_v32, %v88_v42 }
 0x119   :  { %104 = vst.msk [vmem:[#allocation7] sm:$0xff] %vm44_vm0, %v102_v43 }
 0x11a   :  { %v93_v45 = vsel %vm92_vm7, %v139_v32, %v89_v44 }
 0x11b   :  { %v97_v46 = vmul.f32 %v93_v45, %v61_v18 }
 0x11d   :  { %v100_v47 = vmul.f32 %v132_v35, %v97_v46 }
 0x11f   :  { %v103_v48 = vadd.f32 %v133_v39, %v100_v47 }
 0x121   :  { %105 = vst.msk [vmem:[#allocation7 + $0x8] sm:$0xff] %vm44_vm0, %v103_v48 }
 0x122   :  { %118 = dma.vmem_to_hbm [thread:$0]  %s111_s1, 256, %s113_s23, [#allocation4], %s219_s17, %s219_s17, %s220_s18  }
 0x123   :  { %216 = dma.done.wait [#allocation4], 256  }
 0x124   :  { %217 = vsyncadd [#allocation4], 4294967040 }
 0x125   :  { %123 = vsyncpa [#allocation3], 1 }
 0x126   :  { %124 = vsyncpa [#allocation6], 1 }
 0x127   :  { %125 = vsyncpa [#allocation4], 1 }

</bundles_post_ra>
